<compile_context>
chip_gen: v5e
topology: v5e:2x2
jax: 0.10.0
libtpu: 0.0.40
codegen_flags: <defaults>
</compile_context>

<pallas_src>
import functools

import jax
import jax.numpy as jnp
from jax import lax
from jax.experimental import pallas as pl
from jax.experimental.pallas import tpu as pltpu


def _largest_divisor_leq(n: int, cap: int) -> int:
    cap = max(1, min(cap, n))
    for d in range(cap, 0, -1):
        if n % d == 0:
            return d
    return 1


def _pick_tm(M: int, target_rows: int, row_bytes: int) -> int:
    """Sublane tile size for the row axis (multiple of 8 or the full axis)."""
    if M <= 8:
        return M
    cap = max(8, min(target_rows, M))
    if M >= 16:
        # Guarantee >= 2 m-tiles so the "parallel" axis can shard across both
        # TensorCores on v7x (harmless on single-TC v5e/v6e).
        cap = min(cap, max(8, (M // 2) // 8 * 8))
    best = 0
    d = 8
    while d <= cap:
        if M % d == 0:
            best = d
        d += 8
    if best:
        return best
    if M * row_bytes <= 4 * 1024 * 1024:
        return M                       # full row axis (legal for any M)
    return max(8, cap // 8 * 8)        # multiple-of-8 tile; partial last block


def _choose_layout(E: int, T: int):
    """Return (Np, M, tm, m_tiles, Tb, pad) for a flat slab of E elements."""
    Np = None
    # Prefer the largest lane-dense width that divides E exactly and leaves
    # >= 8 sublane rows (no padding); fall back to any 128-multiple divisor;
    # only pad the flat slab as a last resort.
    for cand in (1024, 512, 256, 128):
        if E % cand == 0 and E // cand >= 8:
            Np = cand
            break
    if Np is None:
        for cand in (1024, 512, 256, 128):
            if E % cand == 0:
                Np = cand
                break
    if Np is None:
        Np = 128
    M = -(-E // Np)                    # ceil
    pad = M * Np - E

    # ~2 MiB per block: safe under v5e's 16 MiB default scoped VMEM and
    # v7x's 64 MiB physical VMEM with double-buffered in/out + carry.
    target_bytes = 2 * 1024 * 1024
    row_bytes = Np * 4
    target_rows = max(8, (target_bytes // row_bytes) // 8 * 8)

    tm = _pick_tm(M, target_rows, row_bytes)
    m_tiles = -(-M // tm)

    # Pack Tb timesteps per grid step so each DMA moves ~1-2 MiB; cap the
    # unroll so codegen stays sane. Tb divides T so no ragged time block.
    step_bytes = tm * row_bytes
    tb_cap = min(64, max(1, target_bytes // max(step_bytes, 1)))
    Tb = _largest_divisor_leq(T, tb_cap)
    return Np, M, tm, m_tiles, Tb, pad


def _make_mem_update_kernel(decay: float, thresh: float, Tb: int):
    decay = float(decay)
    thresh = float(thresh)

    def kernel(x_ref, o_ref, mem_ref):
        # grid = (m_tiles, T // Tb); time is innermost so the carry in
        # mem_ref is consistent within each m-tile.
        tb = pl.program_id(1)

        @pl.when(tb == 0)
        def _():
            # mem_prev = 0, spike_prev = 0: both select branches below then
            # reduce to mem_0 = x[0] exactly (0*decay + x == x).
            mem_ref[...] = jnp.zeros_like(mem_ref)

        def step(i, m_prev):
            x_t = x_ref[i].astype(jnp.float32)          # in-kernel upcast
            # spike_{t-1} == (m_prev >= thresh); if it fired, the decayed term
            # vanishes so mem_t = x_t, else mem_t = m_prev*decay + x_t.
            m_new = jnp.where(m_prev >= thresh, x_t, m_prev * decay + x_t)
            o_ref[i] = (m_new >= thresh).astype(o_ref.dtype)
            return m_new

        mem_ref[...] = lax.fori_loop(0, Tb, step, mem_ref[...], unroll=True)

    return kernel


@functools.partial(jax.jit,
                   static_argnames=("decay", "thresh", "alpha", "out_dtype"))
def mem_update(x, decay: float = 0.25, thresh: float = 1.0, alpha: float = 0.5,
               out_dtype=jnp.float32):
    """x: (T, B, C, H, W) -> spikes of the same shape (exactly 0/1).

    alpha is unused in the forward pass (surrogate-gradient parameter only).
    out_dtype=jnp.bfloat16 (or int8) halves/quarters write bandwidth if the
    consumer allows it; default float32 matches the PyTorch module.
    """
    orig_shape = x.shape
    T = orig_shape[0]
    E = 1
    for d in orig_shape[1:]:
        E *= d

    in_bytes = jnp.dtype(x.dtype).itemsize
    out_bytes = jnp.dtype(out_dtype).itemsize

    Np, M, tm, m_tiles, Tb, pad = _choose_layout(E, T)

    x_flat = x.reshape(T, E)           # layout-only view; no dtype cast
    if pad:
        # Rare fallback (E not a multiple of 128). Padded lanes produce
        # spike = 0 and are sliced away below.
        x_flat = jnp.pad(x_flat, ((0, 0), (0, pad)))
    x3 = x_flat.reshape(T, M, Np)

    kernel = _make_mem_update_kernel(decay, thresh, Tb)

    out = pl.pallas_call(
        kernel,
        out_shape=jax.ShapeDtypeStruct((T, M, Np), out_dtype),
        grid_spec=pltpu.PrefetchScalarGridSpec(
            num_scalar_prefetch=0,
            grid=(m_tiles, T // Tb),   # time MUST stay innermost (carry)
            in_specs=[pl.BlockSpec((Tb, tm, Np), lambda m, t: (t, m, 0))],
            out_specs=pl.BlockSpec((Tb, tm, Np), lambda m, t: (t, m, 0)),
            scratch_shapes=[
                pltpu.VMEM((tm, Np), jnp.float32),   # f32 membrane carry
            ],
        ),
        compiler_params=pltpu.CompilerParams(
            # m-tiles are independent (megacore-parallel on v7x); the time
            # recurrence is sequential.
            dimension_semantics=("parallel", "arbitrary"),
        ),
        cost_estimate=pl.CostEstimate(
            flops=4 * T * M * Np,
            transcendentals=0,
            bytes_accessed=T * M * Np * (in_bytes + out_bytes),
        ),
    )(x3)

    out = out.reshape(T, M * Np)
    if pad:
        out = out[:, :E]
    return out.reshape(orig_shape)


def mem_update_ref(x, decay: float = 0.25, thresh: float = 1.0):
    """Pure-JAX reference mirroring the PyTorch loop."""
    T = x.shape[0]
    mem = jnp.zeros_like(x[0])
    spike = jnp.zeros_like(x[0])
    outs = []
    for i in range(T):
        if i >= 1:
            mem = mem * decay * (1.0 - spike) + x[i]
        else:
            mem = x[i]
        spike = (mem >= thresh).astype(x.dtype)
        outs.append(spike)
    return jnp.stack(outs, axis=0)


if __name__ == "__main__":
    key = jax.random.PRNGKey(0)

    # Case 1: small (T, B, C, H, W), single-tile grid with time blocking.
    T, B, C, H, W = 8, 2, 4, 8, 16
    x1 = jax.random.normal(key, (T, B, C, H, W), dtype=jnp.float32) * 1.5
    out1 = jax.block_until_ready(mem_update(x1))
    ref1 = mem_update_ref(x1)
    assert out1.shape == x1.shape and out1.dtype == jnp.float32
    assert jnp.array_equal(out1, ref1), "mismatch vs reference (case 1)"

    # Case 2: larger slab exercising >1 m-tile on the parallel axis.
    x2 = jax.random.normal(jax.random.PRNGKey(1),
                           (4, 2, 4, 32, 64), dtype=jnp.float32) * 1.5
    out2 = jax.block_until_ready(mem_update(x2))
    ref2 = mem_update_ref(x2)
    assert out2.shape == x2.shape
    assert jnp.array_equal(out2, ref2), "mismatch vs reference (case 2)"

    print("KERNEL_OK")
</pallas_src>

<mosaic_0001>
module attributes {stable_mosaic.version = 11 : i64} {
  func.func @kernel(%arg0: i32, %arg1: i32, %arg2: memref<8x8x128xf32, #tpu.memory_space<vmem>>, %arg3: memref<8x8x128xf32, #tpu.memory_space<vmem>>, %arg4: memref<8x128xf32, #tpu.memory_space<vmem>>) attributes {dimension_semantics = [#tpu.dimension_semantics<parallel>, #tpu.dimension_semantics<arbitrary>], iteration_bounds = array<i64: 1, 1>, scalar_prefetch = 0 : i64, scratch_operands = 1 : i64, tpu.core_type = #tpu.core_type<tc>, window_params = [{transform_indices = @transform_0, window_bounds = array<i64: 8, 8, 128>}, {transform_indices = @transform_1, window_bounds = array<i64: 8, 8, 128>}]} {
    %c0_i32 = arith.constant 0 : i32
    %0 = arith.cmpi eq, %arg1, %c0_i32 : i32
    %1 = arith.extui %0 : i1 to i32
    %c0_i32_0 = arith.constant 0 : i32
    %2 = arith.cmpi ne, %1, %c0_i32_0 : i32
    scf.if %2 {
      %cst_60 = arith.constant 0.000000e+00 : f32
      %141 = vector.broadcast %cst_60 : f32 to vector<8x128xf32>
      %c0_61 = arith.constant 0 : index
      %c0_62 = arith.constant 0 : index
      %142 = vector.load %arg4[%c0_61, %c0_62] : memref<8x128xf32, #tpu.memory_space<vmem>>, vector<8x128xf32>
      tpu.vector_store %arg4[%c0_61, %c0_62], %141 {strides = array<i32>} : memref<8x128xf32, #tpu.memory_space<vmem>>, vector<8x128xf32>,
    } else {
    }
    %c0 = arith.constant 0 : index
    %c0_1 = arith.constant 0 : index
    %3 = vector.load %arg4[%c0, %c0_1] : memref<8x128xf32, #tpu.memory_space<vmem>>, vector<8x128xf32>
    %c0_i32_2 = arith.constant 0 : i32
    %4 = arith.index_cast %c0_i32_2 : i32 to index
    %c0_3 = arith.constant 0 : index
    %c0_4 = arith.constant 0 : index
    %5 = vector.load %arg2[%4, %c0_3, %c0_4] : memref<8x8x128xf32, #tpu.memory_space<vmem>>, vector<1x8x128xf32>
    %6 = vector.shape_cast %5 : vector<1x8x128xf32> to vector<8x128xf32>
    %cst = arith.constant 1.000000e+00 : f32
    %7 = vector.broadcast %cst : f32 to vector<8x128xf32>
    %8 = arith.cmpf oge, %3, %7 : vector<8x128xf32>
    %cst_5 = arith.constant 2.500000e-01 : f32
    %9 = vector.broadcast %cst_5 : f32 to vector<8x128xf32>
    %10 = arith.mulf %3, %9 : vector<8x128xf32>
    %11 = arith.addf %10, %6 : vector<8x128xf32>
    %12 = arith.select %8, %6, %11 : vector<8x128xi1>, vector<8x128xf32>
    %cst_6 = arith.constant 1.000000e+00 : f32
    %13 = vector.broadcast %cst_6 : f32 to vector<8x128xf32>
    %14 = arith.cmpf oge, %12, %13 : vector<8x128xf32>
    %15 = arith.extui %14 : vector<8x128xi1> to vector<8x128xi32>
    %16 = arith.sitofp %15 : vector<8x128xi32> to vector<8x128xf32>
    %17 = arith.index_cast %c0_i32_2 : i32 to index
    %c0_7 = arith.constant 0 : index
    %c0_8 = arith.constant 0 : index
    %18 = vector.load %arg3[%17, %c0_7, %c0_8] : memref<8x8x128xf32, #tpu.memory_space<vmem>>, vector<1x8x128xf32>
    %19 = vector.shape_cast %18 : vector<1x8x128xf32> to vector<8x128xf32>
    %20 = vector.shape_cast %16 : vector<8x128xf32> to vector<1x8x128xf32>
    tpu.vector_store %arg3[%17, %c0_7, %c0_8], %20 {strides = array<i32>} : memref<8x8x128xf32, #tpu.memory_space<vmem>>, vector<1x8x128xf32>,
    %c1_i32 = arith.constant 1 : i32
    %21 = arith.index_cast %c1_i32 : i32 to index
    %c0_9 = arith.constant 0 : index
    %c0_10 = arith.constant 0 : index
    %22 = vector.load %arg2[%21, %c0_9, %c0_10] : memref<8x8x128xf32, #tpu.memory_space<vmem>>, vector<1x8x128xf32>
    %23 = vector.shape_cast %22 : vector<1x8x128xf32> to vector<8x128xf32>
    %cst_11 = arith.constant 1.000000e+00 : f32
    %24 = vector.broadcast %cst_11 : f32 to vector<8x128xf32>
    %25 = arith.cmpf oge, %12, %24 : vector<8x128xf32>
    %cst_12 = arith.constant 2.500000e-01 : f32
    %26 = vector.broadcast %cst_12 : f32 to vector<8x128xf32>
    %27 = arith.mulf %12, %26 : vector<8x128xf32>
    %28 = arith.addf %27, %23 : vector<8x128xf32>
    %29 = arith.select %25, %23, %28 : vector<8x128xi1>, vector<8x128xf32>
    %cst_13 = arith.constant 1.000000e+00 : f32
    %30 = vector.broadcast %cst_13 : f32 to vector<8x128xf32>
    %31 = arith.cmpf oge, %29, %30 : vector<8x128xf32>
    %32 = arith.extui %31 : vector<8x128xi1> to vector<8x128xi32>
    %33 = arith.sitofp %32 : vector<8x128xi32> to vector<8x128xf32>
    %34 = arith.index_cast %c1_i32 : i32 to index
    %c0_14 = arith.constant 0 : index
    %c0_15 = arith.constant 0 : index
    %35 = vector.load %arg3[%34, %c0_14, %c0_15] : memref<8x8x128xf32, #tpu.memory_space<vmem>>, vector<1x8x128xf32>
    %36 = vector.shape_cast %35 : vector<1x8x128xf32> to vector<8x128xf32>
    %37 = vector.shape_cast %33 : vector<8x128xf32> to vector<1x8x128xf32>
    tpu.vector_store %arg3[%34, %c0_14, %c0_15], %37 {strides = array<i32>} : memref<8x8x128xf32, #tpu.memory_space<vmem>>, vector<1x8x128xf32>,
    %c2_i32 = arith.constant 2 : i32
    %38 = arith.index_cast %c2_i32 : i32 to index
    %c0_16 = arith.constant 0 : index
    %c0_17 = arith.constant 0 : index
    %39 = vector.load %arg2[%38, %c0_16, %c0_17] : memref<8x8x128xf32, #tpu.memory_space<vmem>>, vector<1x8x128xf32>
    %40 = vector.shape_cast %39 : vector<1x8x128xf32> to vector<8x128xf32>
    %cst_18 = arith.constant 1.000000e+00 : f32
    %41 = vector.broadcast %cst_18 : f32 to vector<8x128xf32>
    %42 = arith.cmpf oge, %29, %41 : vector<8x128xf32>
    %cst_19 = arith.constant 2.500000e-01 : f32
    %43 = vector.broadcast %cst_19 : f32 to vector<8x128xf32>
    %44 = arith.mulf %29, %43 : vector<8x128xf32>
    %45 = arith.addf %44, %40 : vector<8x128xf32>
    %46 = arith.select %42, %40, %45 : vector<8x128xi1>, vector<8x128xf32>
    %cst_20 = arith.constant 1.000000e+00 : f32
    %47 = vector.broadcast %cst_20 : f32 to vector<8x128xf32>
    %48 = arith.cmpf oge, %46, %47 : vector<8x128xf32>
    %49 = arith.extui %48 : vector<8x128xi1> to vector<8x128xi32>
    %50 = arith.sitofp %49 : vector<8x128xi32> to vector<8x128xf32>
    %51 = arith.index_cast %c2_i32 : i32 to index
    %c0_21 = arith.constant 0 : index
    %c0_22 = arith.constant 0 : index
    %52 = vector.load %arg3[%51, %c0_21, %c0_22] : memref<8x8x128xf32, #tpu.memory_space<vmem>>, vector<1x8x128xf32>
    %53 = vector.shape_cast %52 : vector<1x8x128xf32> to vector<8x128xf32>
    %54 = vector.shape_cast %50 : vector<8x128xf32> to vector<1x8x128xf32>
    tpu.vector_store %arg3[%51, %c0_21, %c0_22], %54 {strides = array<i32>} : memref<8x8x128xf32, #tpu.memory_space<vmem>>, vector<1x8x128xf32>,
    %c3_i32 = arith.constant 3 : i32
    %55 = arith.index_cast %c3_i32 : i32 to index
    %c0_23 = arith.constant 0 : index
    %c0_24 = arith.constant 0 : index
    %56 = vector.load %arg2[%55, %c0_23, %c0_24] : memref<8x8x128xf32, #tpu.memory_space<vmem>>, vector<1x8x128xf32>
    %57 = vector.shape_cast %56 : vector<1x8x128xf32> to vector<8x128xf32>
    %cst_25 = arith.constant 1.000000e+00 : f32
    %58 = vector.broadcast %cst_25 : f32 to vector<8x128xf32>
    %59 = arith.cmpf oge, %46, %58 : vector<8x128xf32>
    %cst_26 = arith.constant 2.500000e-01 : f32
    %60 = vector.broadcast %cst_26 : f32 to vector<8x128xf32>
    %61 = arith.mulf %46, %60 : vector<8x128xf32>
    %62 = arith.addf %61, %57 : vector<8x128xf32>
    %63 = arith.select %59, %57, %62 : vector<8x128xi1>, vector<8x128xf32>
    %cst_27 = arith.constant 1.000000e+00 : f32
    %64 = vector.broadcast %cst_27 : f32 to vector<8x128xf32>
    %65 = arith.cmpf oge, %63, %64 : vector<8x128xf32>
    %66 = arith.extui %65 : vector<8x128xi1> to vector<8x128xi32>
    %67 = arith.sitofp %66 : vector<8x128xi32> to vector<8x128xf32>
    %68 = arith.index_cast %c3_i32 : i32 to index
    %c0_28 = arith.constant 0 : index
    %c0_29 = arith.constant 0 : index
    %69 = vector.load %arg3[%68, %c0_28, %c0_29] : memref<8x8x128xf32, #tpu.memory_space<vmem>>, vector<1x8x128xf32>
    %70 = vector.shape_cast %69 : vector<1x8x128xf32> to vector<8x128xf32>
    %71 = vector.shape_cast %67 : vector<8x128xf32> to vector<1x8x128xf32>
    tpu.vector_store %arg3[%68, %c0_28, %c0_29], %71 {strides = array<i32>} : memref<8x8x128xf32, #tpu.memory_space<vmem>>, vector<1x8x128xf32>,
    %c4_i32 = arith.constant 4 : i32
    %72 = arith.index_cast %c4_i32 : i32 to index
    %c0_30 = arith.constant 0 : index
    %c0_31 = arith.constant 0 : index
    %73 = vector.load %arg2[%72, %c0_30, %c0_31] : memref<8x8x128xf32, #tpu.memory_space<vmem>>, vector<1x8x128xf32>
    %74 = vector.shape_cast %73 : vector<1x8x128xf32> to vector<8x128xf32>
    %cst_32 = arith.constant 1.000000e+00 : f32
    %75 = vector.broadcast %cst_32 : f32 to vector<8x128xf32>
    %76 = arith.cmpf oge, %63, %75 : vector<8x128xf32>
    %cst_33 = arith.constant 2.500000e-01 : f32
    %77 = vector.broadcast %cst_33 : f32 to vector<8x128xf32>
    %78 = arith.mulf %63, %77 : vector<8x128xf32>
    %79 = arith.addf %78, %74 : vector<8x128xf32>
    %80 = arith.select %76, %74, %79 : vector<8x128xi1>, vector<8x128xf32>
    %cst_34 = arith.constant 1.000000e+00 : f32
    %81 = vector.broadcast %cst_34 : f32 to vector<8x128xf32>
    %82 = arith.cmpf oge, %80, %81 : vector<8x128xf32>
    %83 = arith.extui %82 : vector<8x128xi1> to vector<8x128xi32>
    %84 = arith.sitofp %83 : vector<8x128xi32> to vector<8x128xf32>
    %85 = arith.index_cast %c4_i32 : i32 to index
    %c0_35 = arith.constant 0 : index
    %c0_36 = arith.constant 0 : index
    %86 = vector.load %arg3[%85, %c0_35, %c0_36] : memref<8x8x128xf32, #tpu.memory_space<vmem>>, vector<1x8x128xf32>
    %87 = vector.shape_cast %86 : vector<1x8x128xf32> to vector<8x128xf32>
    %88 = vector.shape_cast %84 : vector<8x128xf32> to vector<1x8x128xf32>
    tpu.vector_store %arg3[%85, %c0_35, %c0_36], %88 {strides = array<i32>} : memref<8x8x128xf32, #tpu.memory_space<vmem>>, vector<1x8x128xf32>,
    %c5_i32 = arith.constant 5 : i32
    %89 = arith.index_cast %c5_i32 : i32 to index
    %c0_37 = arith.constant 0 : index
    %c0_38 = arith.constant 0 : index
    %90 = vector.load %arg2[%89, %c0_37, %c0_38] : memref<8x8x128xf32, #tpu.memory_space<vmem>>, vector<1x8x128xf32>
    %91 = vector.shape_cast %90 : vector<1x8x128xf32> to vector<8x128xf32>
    %cst_39 = arith.constant 1.000000e+00 : f32
    %92 = vector.broadcast %cst_39 : f32 to vector<8x128xf32>
    %93 = arith.cmpf oge, %80, %92 : vector<8x128xf32>
    %cst_40 = arith.constant 2.500000e-01 : f32
    %94 = vector.broadcast %cst_40 : f32 to vector<8x128xf32>
    %95 = arith.mulf %80, %94 : vector<8x128xf32>
    %96 = arith.addf %95, %91 : vector<8x128xf32>
    %97 = arith.select %93, %91, %96 : vector<8x128xi1>, vector<8x128xf32>
    %cst_41 = arith.constant 1.000000e+00 : f32
    %98 = vector.broadcast %cst_41 : f32 to vector<8x128xf32>
    %99 = arith.cmpf oge, %97, %98 : vector<8x128xf32>
    %100 = arith.extui %99 : vector<8x128xi1> to vector<8x128xi32>
    %101 = arith.sitofp %100 : vector<8x128xi32> to vector<8x128xf32>
    %102 = arith.index_cast %c5_i32 : i32 to index
    %c0_42 = arith.constant 0 : index
    %c0_43 = arith.constant 0 : index
    %103 = vector.load %arg3[%102, %c0_42, %c0_43] : memref<8x8x128xf32, #tpu.memory_space<vmem>>, vector<1x8x128xf32>
    %104 = vector.shape_cast %103 : vector<1x8x128xf32> to vector<8x128xf32>
    %105 = vector.shape_cast %101 : vector<8x128xf32> to vector<1x8x128xf32>
    tpu.vector_store %arg3[%102, %c0_42, %c0_43], %105 {strides = array<i32>} : memref<8x8x128xf32, #tpu.memory_space<vmem>>, vector<1x8x128xf32>,
    %c6_i32 = arith.constant 6 : i32
    %106 = arith.index_cast %c6_i32 : i32 to index
    %c0_44 = arith.constant 0 : index
    %c0_45 = arith.constant 0 : index
    %107 = vector.load %arg2[%106, %c0_44, %c0_45] : memref<8x8x128xf32, #tpu.memory_space<vmem>>, vector<1x8x128xf32>
    %108 = vector.shape_cast %107 : vector<1x8x128xf32> to vector<8x128xf32>
    %cst_46 = arith.constant 1.000000e+00 : f32
    %109 = vector.broadcast %cst_46 : f32 to vector<8x128xf32>
    %110 = arith.cmpf oge, %97, %109 : vector<8x128xf32>
    %cst_47 = arith.constant 2.500000e-01 : f32
    %111 = vector.broadcast %cst_47 : f32 to vector<8x128xf32>
    %112 = arith.mulf %97, %111 : vector<8x128xf32>
    %113 = arith.addf %112, %108 : vector<8x128xf32>
    %114 = arith.select %110, %108, %113 : vector<8x128xi1>, vector<8x128xf32>
    %cst_48 = arith.constant 1.000000e+00 : f32
    %115 = vector.broadcast %cst_48 : f32 to vector<8x128xf32>
    %116 = arith.cmpf oge, %114, %115 : vector<8x128xf32>
    %117 = arith.extui %116 : vector<8x128xi1> to vector<8x128xi32>
    %118 = arith.sitofp %117 : vector<8x128xi32> to vector<8x128xf32>
    %119 = arith.index_cast %c6_i32 : i32 to index
    %c0_49 = arith.constant 0 : index
    %c0_50 = arith.constant 0 : index
    %120 = vector.load %arg3[%119, %c0_49, %c0_50] : memref<8x8x128xf32, #tpu.memory_space<vmem>>, vector<1x8x128xf32>
    %121 = vector.shape_cast %120 : vector<1x8x128xf32> to vector<8x128xf32>
    %122 = vector.shape_cast %118 : vector<8x128xf32> to vector<1x8x128xf32>
    tpu.vector_store %arg3[%119, %c0_49, %c0_50], %122 {strides = array<i32>} : memref<8x8x128xf32, #tpu.memory_space<vmem>>, vector<1x8x128xf32>,
    %c7_i32 = arith.constant 7 : i32
    %123 = arith.index_cast %c7_i32 : i32 to index
    %c0_51 = arith.constant 0 : index
    %c0_52 = arith.constant 0 : index
    %124 = vector.load %arg2[%123, %c0_51, %c0_52] : memref<8x8x128xf32, #tpu.memory_space<vmem>>, vector<1x8x128xf32>
    %125 = vector.shape_cast %124 : vector<1x8x128xf32> to vector<8x128xf32>
    %cst_53 = arith.constant 1.000000e+00 : f32
    %126 = vector.broadcast %cst_53 : f32 to vector<8x128xf32>
    %127 = arith.cmpf oge, %114, %126 : vector<8x128xf32>
    %cst_54 = arith.constant 2.500000e-01 : f32
    %128 = vector.broadcast %cst_54 : f32 to vector<8x128xf32>
    %129 = arith.mulf %114, %128 : vector<8x128xf32>
    %130 = arith.addf %129, %125 : vector<8x128xf32>
    %131 = arith.select %127, %125, %130 : vector<8x128xi1>, vector<8x128xf32>
    %cst_55 = arith.constant 1.000000e+00 : f32
    %132 = vector.broadcast %cst_55 : f32 to vector<8x128xf32>
    %133 = arith.cmpf oge, %131, %132 : vector<8x128xf32>
    %134 = arith.extui %133 : vector<8x128xi1> to vector<8x128xi32>
    %135 = arith.sitofp %134 : vector<8x128xi32> to vector<8x128xf32>
    %136 = arith.index_cast %c7_i32 : i32 to index
    %c0_56 = arith.constant 0 : index
    %c0_57 = arith.constant 0 : index
    %137 = vector.load %arg3[%136, %c0_56, %c0_57] : memref<8x8x128xf32, #tpu.memory_space<vmem>>, vector<1x8x128xf32>
    %138 = vector.shape_cast %137 : vector<1x8x128xf32> to vector<8x128xf32>
    %139 = vector.shape_cast %135 : vector<8x128xf32> to vector<1x8x128xf32>
    tpu.vector_store %arg3[%136, %c0_56, %c0_57], %139 {strides = array<i32>} : memref<8x8x128xf32, #tpu.memory_space<vmem>>, vector<1x8x128xf32>,
    %c8_i32 = arith.constant 8 : i32
    %c0_58 = arith.constant 0 : index
    %c0_59 = arith.constant 0 : index
    %140 = vector.load %arg4[%c0_58, %c0_59] : memref<8x128xf32, #tpu.memory_space<vmem>>, vector<8x128xf32>
    tpu.vector_store %arg4[%c0_58, %c0_59], %131 {strides = array<i32>} : memref<8x128xf32, #tpu.memory_space<vmem>>, vector<8x128xf32>,
    return
  }
  func.func @transform_0(%arg0: i32, %arg1: i32) -> (i32, i32, i32) {
    %c0_i32 = arith.constant 0 : i32
    %c0_i32_0 = arith.constant 0 : i32
    return %arg1, %arg0, %c0_i32 : i32, i32, i32
  }
  func.func @transform_1(%arg0: i32, %arg1: i32) -> (i32, i32, i32) {
    %c0_i32 = arith.constant 0 : i32
    %c0_i32_0 = arith.constant 0 : i32
    return %arg1, %arg0, %c0_i32 : i32, i32, i32
  }
}

</mosaic_0001>

<bundles_post_ra>
// kernel: mem_update.1
= control target key start
LH: loop header
LB: loop body
LE: loop exit
PB: predicated region body
PF: predicated region fallthrough
CT: control target
= control target key end

     0   :  { %v121_v3 = vmov 0.0   ;;  %s180_s0 = inlined_call_operand.vmem [shape: f32[8,8,128], index: 0, kind: input, shape index: {}]   ;;  %s181_s1 = inlined_call_operand.vmem [shape: f32[8,8,128], index: 1, kind: output, shape index: {}]  }
   0x1   :  { %v14_v0 = vld [vmem:[%s180_s0] sm:$0xff]  ;;  %v99_v1 = vld [vmem:[%s180_s0 + $0x8] sm:$0xff]  ;;  %v102_v7 = vld [vmem:[%s180_s0 + $0x10] sm:$0xff] }
   0x2   :  { %vm19_vm0 = vcmp.ge.f32.partialorder %v14_v0, 1.0  ;;  %v25_v2 = vmul.f32 0.25, %v14_v0  ;;  %v105_v12 = vld [vmem:[%s180_s0 + $0x18] sm:$0xff]  ;;  %v108_v17 = vld [vmem:[%s180_s0 + $0x20] sm:$0xff]  ;;  %v111_v22 = vld [vmem:[%s180_s0 + $0x28] sm:$0xff] }
   0x3   :  { %v98_v4 = vsel %vm19_vm0, 1.0, %v121_v3  ;;  %v114_v27 = vld [vmem:[%s180_s0 + $0x30] sm:$0xff]  ;;  %v117_v32 = vld [vmem:[%s180_s0 + $0x38] sm:$0xff] }
   0x4   :  { %22 = vst [vmem:[%s181_s1] sm:$0xff] %v98_v4  ;;  %v26_v5 = vadd.f32 %v99_v1, %v25_v2 }
   0x6   :  { %v27_v6 = vsel %vm19_vm0, %v99_v1, %v26_v5 }
   0x7   :  { %vm28_vm1 = vcmp.ge.f32.partialorder %v27_v6, 1.0  ;;  %v35_v8 = vmul.f32 0.25, %v27_v6 }
   0x8   :  { %v100_v9 = vsel %vm28_vm1, 1.0, %v121_v3 }
   0x9   :  { %101 = vst [vmem:[%s181_s1 + $0x8] sm:$0xff] %v100_v9  ;;  %v36_v10 = vadd.f32 %v102_v7, %v35_v8 }
   0xb   :  { %v37_v11 = vsel %vm28_vm1, %v102_v7, %v36_v10 }
   0xc   :  { %vm38_vm2 = vcmp.ge.f32.partialorder %v37_v11, 1.0  ;;  %v45_v13 = vmul.f32 0.25, %v37_v11 }
   0xd   :  { %v103_v14 = vsel %vm38_vm2, 1.0, %v121_v3 }
   0xe   :  { %104 = vst [vmem:[%s181_s1 + $0x10] sm:$0xff] %v103_v14  ;;  %v46_v15 = vadd.f32 %v105_v12, %v45_v13 }
  0x10   :  { %v47_v16 = vsel %vm38_vm2, %v105_v12, %v46_v15 }
  0x11   :  { %vm48_vm3 = vcmp.ge.f32.partialorder %v47_v16, 1.0  ;;  %v55_v18 = vmul.f32 0.25, %v47_v16 }
  0x12   :  { %v106_v19 = vsel %vm48_vm3, 1.0, %v121_v3 }
  0x13   :  { %107 = vst [vmem:[%s181_s1 + $0x18] sm:$0xff] %v106_v19  ;;  %v56_v20 = vadd.f32 %v108_v17, %v55_v18 }
  0x15   :  { %v57_v21 = vsel %vm48_vm3, %v108_v17, %v56_v20 }
  0x16   :  { %vm58_vm4 = vcmp.ge.f32.partialorder %v57_v21, 1.0  ;;  %v65_v23 = vmul.f32 0.25, %v57_v21 }
  0x17   :  { %v109_v24 = vsel %vm58_vm4, 1.0, %v121_v3 }
  0x18   :  { %110 = vst [vmem:[%s181_s1 + $0x20] sm:$0xff] %v109_v24  ;;  %v66_v25 = vadd.f32 %v111_v22, %v65_v23 }
  0x1a   :  { %v67_v26 = vsel %vm58_vm4, %v111_v22, %v66_v25 }
  0x1b   :  { %vm68_vm5 = vcmp.ge.f32.partialorder %v67_v26, 1.0  ;;  %v75_v28 = vmul.f32 0.25, %v67_v26 }
  0x1c   :  { %v112_v29 = vsel %vm68_vm5, 1.0, %v121_v3 }
  0x1d   :  { %113 = vst [vmem:[%s181_s1 + $0x28] sm:$0xff] %v112_v29  ;;  %v76_v30 = vadd.f32 %v114_v27, %v75_v28 }
  0x1f   :  { %v77_v31 = vsel %vm68_vm5, %v114_v27, %v76_v30 }
  0x20   :  { %vm78_vm6 = vcmp.ge.f32.partialorder %v77_v31, 1.0  ;;  %v85_v33 = vmul.f32 0.25, %v77_v31 }
  0x21   :  { %v115_v34 = vsel %vm78_vm6, 1.0, %v121_v3 }
  0x22   :  { %116 = vst [vmem:[%s181_s1 + $0x30] sm:$0xff] %v115_v34  ;;  %v86_v35 = vadd.f32 %v117_v32, %v85_v33 }
  0x24   :  { %v87_v36 = vsel %vm78_vm6, %v117_v32, %v86_v35 }
  0x25   :  { %vm88_vm7 = vcmp.ge.f32.partialorder %v87_v36, 1.0 }
  0x26   :  { %v118_v37 = vsel %vm88_vm7, 1.0, %v121_v3 }
  0x27   :  { %119 = vst [vmem:[%s181_s1 + $0x38] sm:$0xff] %v118_v37 }

</bundles_post_ra>
